<compile_context>
chip_gen: v6e
topology: v6e:2x2x1
jax: 0.10.0
libtpu: 0.0.40
codegen_flags: <defaults>
</compile_context>

<pallas_src>
import jax
import jax.numpy as jnp
from jax.experimental import pallas as pl
from jax.experimental.pallas import tpu as pltpu

_LANE = 128
_VMEM_BUDGET = 24 * 1024 * 1024   # target double-buffered working set (v7x-safe)
_VMEM_LIMIT = 32 * 1024 * 1024    # scoped-VMEM limit (raises v5e's 16 MiB default)
_TM_MAX = 1024                    # row-tile cap assumed when sizing K/N tiles


# ---------------------------------------------------------------------------
# Tiling helpers
# ---------------------------------------------------------------------------
def _round_up(x, m):
    return (x + m - 1) // m * m


def _sublane(dtype):
    # native packed sublane tile: f32 -> 8 rows, bf16 -> 16, int8/fp8 -> 32
    return {4: 8, 2: 16, 1: 32}[jnp.dtype(dtype).itemsize]


def _balanced_tile(dim, pref, align):
    """Split `dim` into equal-ish tiles near `pref` with minimal padding.
    Returns (tile, padded) with padded % tile == 0 and padded >= dim."""
    dim_a = _round_up(dim, align)
    if dim_a <= pref:
        return dim_a, dim_a
    n_tiles = -(-dim // pref)                       # ceil(dim / pref)
    tile = _round_up(-(-dim // n_tiles), align)     # ceil(dim / n_tiles), aligned
    return tile, _round_up(dim, tile)


def _vmem_need(rows, tn, tk, itemsize, vb=1):
    """Double-buffered working set for one grid step."""
    in_b = 2 * vb * (rows * tk + tk * tn + tn) * itemsize   # x, W, bias (2-deep)
    out_b = 2 * vb * rows * tn * itemsize                   # output tile (2-deep)
    acc_b = vb * rows * tn * 4                              # f32 accumulator
    return in_b + out_b + acc_b


def _pick_kn_tiles(nf, tw, itemsize, rows_hint=_TM_MAX):
    """(tk, nf_p), (tn, tw_p) sized so a `rows_hint`-row tile fits the budget.
    Depends only on (nf, tw, dtype) => weights can be padded once at prep."""
    tw_128 = _round_up(tw, _LANE)
    if tw_128 <= 1024:
        tn, tw_p = tw_128, tw_128            # collapse the output-column axis
    else:
        tn, tw_p = _balanced_tile(tw, 512, _LANE)
    tk, nf_p = _balanced_tile(nf, 1024, _LANE)
    while _vmem_need(rows_hint, tn, tk, itemsize) > _VMEM_BUDGET:
        if tk > _LANE:
            tk, nf_p = _balanced_tile(nf, tk // 2, _LANE)
        elif tn > _LANE:
            tn, tw_p = _balanced_tile(tw, tn // 2, _LANE)
        else:
            break
    return (tk, nf_p), (tn, tw_p)


def _pick_rows_tile(m, sub, tn, tk, itemsize, vb=1):
    """Row tile covering m in as few tiles as the VMEM budget allows."""
    tm, m_p = _balanced_tile(m, _TM_MAX, sub)
    while tm > sub and _vmem_need(tm, tn, tk, itemsize, vb) > _VMEM_BUDGET:
        new_tm, new_m_p = _balanced_tile(m, max(tm // 2, sub), sub)
        if new_tm == tm:
            break
        tm, m_p = new_tm, new_m_p
    return tm, m_p


def _pick_var_block(n_vars, tk, tn, itemsize, rows_hint=256):
    """Variables per grid step for the individual head.  Block several tiny
    per-variable matmuls together to amortise ~0.35us/step overhead, but never
    pad n_vars by more than 25% (that would inflate weight HBM traffic)."""
    if n_vars == 1 or tk * tn * itemsize >= 512 * 1024:
        return 1, n_vars
    for cand in (8, 4, 2):
        n_vars_p = _round_up(n_vars, cand)
        if ((n_vars_p - n_vars) * 4 <= n_vars
                and _vmem_need(rows_hint, tn, tk, itemsize, cand) <= _VMEM_BUDGET):
            return cand, n_vars_p
    return 1, n_vars


# ---------------------------------------------------------------------------
# Shared head (individual=False):  y[m, t] = sum_k x[m, k] * Wt[k, t] + b[t]
# ---------------------------------------------------------------------------
def _shared_head_kernel(x_ref, wt_ref, b_ref, o_ref, acc_ref):
    k = pl.program_id(2)

    @pl.when(k == 0)
    def _():
        acc_ref[...] = jnp.zeros_like(acc_ref)

    acc_ref[...] += jnp.dot(x_ref[...], wt_ref[...],
                            preferred_element_type=jnp.float32)

    @pl.when(k == pl.num_programs(2) - 1)
    def _():
        o_ref[...] = (acc_ref[...] + b_ref[...].astype(jnp.float32)
                      ).astype(o_ref.dtype)


def shared_head(x_flat, params):
    """x_flat: [M, nf] -> [M, tw].  Weights pre-padded: weight_t_p [nf_p, tw_p]."""
    w_p, b_p = params["weight_t_p"], params["bias_p"]
    tk, tn, tw = params["tk"], params["tn"], params["tw"]
    nf_p, tw_p = w_p.shape
    M, nf = x_flat.shape
    dtype = w_p.dtype
    itemsize = jnp.dtype(dtype).itemsize
    sub = _sublane(dtype)

    x = x_flat.astype(dtype)                     # cast activations at the boundary
    tm, m_p = _pick_rows_tile(M, sub, tn, tk, itemsize)
    if (m_p, nf_p) != x.shape:                   # pad x only, only when needed
        x = jnp.pad(x, ((0, m_p - M), (0, nf_p - nf)))

    gm, gn, gk = m_p // tm, tw_p // tn, nf_p // tk
    cost = pl.CostEstimate(
        flops=2 * m_p * nf_p * tw_p,
        transcendentals=0,
        bytes_accessed=int((m_p * nf_p * gn        # x re-streamed per column tile
                            + nf_p * tw_p * gm     # W re-streamed per row tile
                            + tw_p * gm * gk       # bias
                            + m_p * tw_p) * itemsize))

    out_p = pl.pallas_call(
        _shared_head_kernel,
        out_shape=jax.ShapeDtypeStruct((m_p, tw_p), dtype),
        grid=(gm, gn, gk),
        in_specs=[
            pl.BlockSpec((tm, tk), lambda i, j, k: (i, k)),
            pl.BlockSpec((tk, tn), lambda i, j, k: (k, j)),
            pl.BlockSpec((1, tn), lambda i, j, k: (0, j)),
        ],
        out_specs=pl.BlockSpec((tm, tn), lambda i, j, k: (i, j)),
        scratch_shapes=[pltpu.VMEM((tm, tn), jnp.float32)],
        compiler_params=pltpu.CompilerParams(
            dimension_semantics=("parallel", "parallel", "arbitrary"),
            vmem_limit_bytes=_VMEM_LIMIT),
        cost_estimate=cost,
    )(x, w_p, b_p)
    return out_p[:M, :tw].astype(x_flat.dtype)


# ---------------------------------------------------------------------------
# Individual head (individual=True): one Linear per variable; VB vars per step.
# ---------------------------------------------------------------------------
def _individual_head_kernel(x_ref, wt_ref, b_ref, o_ref, acc_ref):
    k = pl.program_id(3)

    @pl.when(k == 0)
    def _():
        acc_ref[...] = jnp.zeros_like(acc_ref)

    # VB small independent matmuls per grid step (statically unrolled, VB <= 8).
    for v in range(acc_ref.shape[0]):
        acc_ref[v] += jnp.dot(x_ref[v], wt_ref[v],
                              preferred_element_type=jnp.float32)

    @pl.when(k == pl.num_programs(3) - 1)
    def _():
        o_ref[...] = (acc_ref[...] + b_ref[...].astype(jnp.float32)
                      ).astype(o_ref.dtype)


def individual_head(x_flat, params):
    """x_flat: [bs, n_vars, nf] -> [bs, n_vars, tw]."""
    w_p, b_p = params["weights_t_p"], params["biases_p"]  # [nvp,nf_p,tw_p],[nvp,1,tw_p]
    tk, tn, vb = params["tk"], params["tn"], params["vb"]
    tw, n_vars = params["tw"], params["n_vars"]
    nvp, nf_p, tw_p = w_p.shape
    bs, _, nf = x_flat.shape
    dtype = w_p.dtype
    itemsize = jnp.dtype(dtype).itemsize
    sub = _sublane(dtype)

    tb, bs_p = _pick_rows_tile(bs, sub, tn, tk, itemsize, vb=vb)

    # Activation transpose/pad is cheap relative to the weight stream.
    x_v = jnp.transpose(x_flat.astype(dtype), (1, 0, 2))   # [n_vars, bs, nf]
    if (nvp, bs_p, nf_p) != x_v.shape:
        x_v = jnp.pad(x_v, ((0, nvp - n_vars), (0, bs_p - bs), (0, nf_p - nf)))

    gv, gi, gj, gk = nvp // vb, bs_p // tb, tw_p // tn, nf_p // tk
    cost = pl.CostEstimate(
        flops=2 * nvp * bs_p * nf_p * tw_p,
        transcendentals=0,
        bytes_accessed=int((nvp * bs_p * nf_p * gj
                            + nvp * nf_p * tw_p * gi
                            + nvp * tw_p * gi * gk
                            + nvp * bs_p * tw_p) * itemsize))

    out_v = pl.pallas_call(
        _individual_head_kernel,
        out_shape=jax.ShapeDtypeStruct((nvp, bs_p, tw_p), dtype),
        grid=(gv, gi, gj, gk),
        in_specs=[
            pl.BlockSpec((vb, tb, tk), lambda v, i, j, k: (v, i, k)),
            pl.BlockSpec((vb, tk, tn), lambda v, i, j, k: (v, k, j)),
            pl.BlockSpec((vb, 1, tn), lambda v, i, j, k: (v, 0, j)),
        ],
        out_specs=pl.BlockSpec((vb, tb, tn), lambda v, i, j, k: (v, i, j)),
        scratch_shapes=[pltpu.VMEM((vb, tb, tn), jnp.float32)],
        compiler_params=pltpu.CompilerParams(
            dimension_semantics=("parallel", "parallel", "parallel", "arbitrary"),
            vmem_limit_bytes=_VMEM_LIMIT),
        cost_estimate=cost,
    )(x_v, w_p, b_p)
    out_v = out_v[:n_vars, :bs, :tw].astype(x_flat.dtype)
    return jnp.transpose(out_v, (1, 0, 2))                  # [bs, n_vars, tw]


# ---------------------------------------------------------------------------
# Flatten_Head forward + parameter prep
# ---------------------------------------------------------------------------
def flatten_head_forward(x, params, individual):
    """x: [bs, n_vars, d_model, patch_num] -> [bs, n_vars, target_window]."""
    bs, n_vars, d_model, patch_num = x.shape
    nf = d_model * patch_num
    x_flat = x.reshape(bs, n_vars, nf)          # nn.Flatten(start_dim=-2)
    if individual:
        out = individual_head(x_flat, params)
    else:
        out = shared_head(x_flat.reshape(bs * n_vars, nf), params)
        out = out.reshape(bs, n_vars, -1)
    # head_dropout (nn.Dropout) is identity at inference -> no-op.
    return out


def make_params(key, individual, n_vars, nf, target_window,
                dtype=jnp.float32, store_dtype=None):
    """PyTorch-Linear-equivalent params, stored pre-transposed AND pre-padded to
    the kernel tile grid (no per-call HBM pass over the weights).
    `store_dtype=jnp.bfloat16` halves weight HBM bytes; accumulation stays f32
    inside the kernels.  Unpadded copies are kept only for reference checks."""
    store_dtype = dtype if store_dtype is None else store_dtype
    itemsize = jnp.dtype(store_dtype).itemsize
    bound = 1.0 / (nf ** 0.5)
    kw, kb = jax.random.split(key)
    if individual:
        w = jax.random.uniform(kw, (n_vars, target_window, nf), dtype,
                               minval=-bound, maxval=bound)
        b = jax.random.uniform(kb, (n_vars, target_window), dtype,
                               minval=-bound, maxval=bound)
        (tk, nf_p), (tn, tw_p) = _pick_kn_tiles(nf, target_window, itemsize,
                                                rows_hint=256)
        vb, nvp = _pick_var_block(n_vars, tk, tn, itemsize, rows_hint=256)
        w_t = jnp.transpose(w, (0, 2, 1)).astype(store_dtype)   # [n_vars, nf, tw]
        w_t = jnp.pad(w_t, ((0, nvp - n_vars), (0, nf_p - nf),
                            (0, tw_p - target_window)))
        b_p = jnp.pad(b.astype(store_dtype),
                      ((0, nvp - n_vars), (0, tw_p - target_window)))
        return {"weights_t_p": w_t, "biases_p": b_p.reshape(nvp, 1, tw_p),
                "tk": tk, "tn": tn, "vb": vb,
                "n_vars": n_vars, "nf": nf, "tw": target_window,
                "weights": w, "biases": b}
    else:
        w = jax.random.uniform(kw, (target_window, nf), dtype,
                               minval=-bound, maxval=bound)
        b = jax.random.uniform(kb, (target_window,), dtype,
                               minval=-bound, maxval=bound)
        (tk, nf_p), (tn, tw_p) = _pick_kn_tiles(nf, target_window, itemsize)
        w_t = jnp.pad(w.T.astype(store_dtype),
                      ((0, nf_p - nf), (0, tw_p - target_window)))
        b_p = jnp.pad(b.astype(store_dtype), (0, tw_p - target_window))
        return {"weight_t_p": w_t, "bias_p": b_p.reshape(1, tw_p),
                "tk": tk, "tn": tn,
                "nf": nf, "tw": target_window,
                "weight": w, "bias": b}


if __name__ == "__main__":
    key = jax.random.PRNGKey(0)
    kx, kp1, kp2, kp3 = jax.random.split(key, 4)

    # Small shapes consistent with the module.
    bs, n_vars, d_model, patch_num = 2, 4, 16, 8
    nf = d_model * patch_num          # 128
    target_window = 32

    x = jax.random.normal(kx, (bs, n_vars, d_model, patch_num), jnp.float32)
    x_flat = x.reshape(bs, n_vars, nf)

    # --- shared (individual=False), f32 weights ---
    p_shared = make_params(kp1, False, n_vars, nf, target_window)
    out_shared = flatten_head_forward(x, p_shared, individual=False)
    jax.block_until_ready(out_shared)
    ref_shared = x_flat @ p_shared["weight"].T + p_shared["bias"]
    assert out_shared.shape == (bs, n_vars, target_window)
    assert jnp.allclose(out_shared, ref_shared, atol=1e-4, rtol=1e-4)

    # --- individual (one Linear per variable), f32 weights ---
    p_ind = make_params(kp2, True, n_vars, nf, target_window)
    out_ind = flatten_head_forward(x, p_ind, individual=True)
    jax.block_until_ready(out_ind)
    ref_ind = (jnp.einsum("bvk,vtk->bvt", x_flat, p_ind["weights"])
               + p_ind["biases"][None, :, :])
    assert out_ind.shape == (bs, n_vars, target_window)
    assert jnp.allclose(out_ind, ref_ind, atol=1e-4, rtol=1e-4)

    # --- bf16 weight storage (HBM-bandwidth-saving path), shared head ---
    p_bf16 = make_params(kp3, False, n_vars, nf, target_window,
                         store_dtype=jnp.bfloat16)
    out_bf16 = flatten_head_forward(x, p_bf16, individual=False)
    jax.block_until_ready(out_bf16)
    ref_bf16 = x_flat @ p_bf16["weight"].T + p_bf16["bias"]
    assert out_bf16.shape == (bs, n_vars, target_window)
    assert jnp.allclose(out_bf16.astype(jnp.float32), ref_bf16,
                        atol=5e-2, rtol=5e-2)

    print("KERNEL_OK")
</pallas_src>

<mosaic_0001>
module attributes {stable_mosaic.version = 11 : i64} {
  func.func @_shared_head_kernel(%arg0: i32, %arg1: i32, %arg2: i32, %arg3: memref<8x128xf32, #tpu.memory_space<vmem>>, %arg4: memref<128x128xf32, #tpu.memory_space<vmem>>, %arg5: memref<1x128xf32, #tpu.memory_space<vmem>>, %arg6: memref<8x128xf32, #tpu.memory_space<vmem>>, %arg7: memref<8x128xf32, #tpu.memory_space<vmem>>) attributes {dimension_semantics = [#tpu.dimension_semantics<parallel>, #tpu.dimension_semantics<parallel>, #tpu.dimension_semantics<arbitrary>], iteration_bounds = array<i64: 1, 1, 1>, scalar_prefetch = 0 : i64, scratch_operands = 1 : i64, tpu.core_type = #tpu.core_type<tc>, window_params = [{transform_indices = @transform_0, window_bounds = array<i64: 8, 128>}, {transform_indices = @transform_1, window_bounds = array<i64: 128, 128>}, {transform_indices = @transform_2, window_bounds = array<i64: 1, 128>}, {transform_indices = @transform_3, window_bounds = array<i64: 8, 128>}]} {
    %c0_i32 = arith.constant 0 : i32
    %0 = arith.cmpi eq, %arg2, %c0_i32 : i32
    %1 = arith.extui %0 : i1 to i32
    %c0_i32_0 = arith.constant 0 : i32
    %2 = arith.cmpi ne, %1, %c0_i32_0 : i32
    scf.if %2 {
      %cst_10 = arith.constant 0.000000e+00 : f32
      %12 = vector.broadcast %cst_10 : f32 to vector<8x128xf32>
      %c0_11 = arith.constant 0 : index
      %c0_12 = arith.constant 0 : index
      %13 = vector.load %arg7[%c0_11, %c0_12] : memref<8x128xf32, #tpu.memory_space<vmem>>, vector<8x128xf32>
      tpu.vector_store %arg7[%c0_11, %c0_12], %12 {strides = array<i32>} : memref<8x128xf32, #tpu.memory_space<vmem>>, vector<8x128xf32>,
    } else {
    }
    %c0 = arith.constant 0 : index
    %c0_1 = arith.constant 0 : index
    %3 = vector.load %arg7[%c0, %c0_1] : memref<8x128xf32, #tpu.memory_space<vmem>>, vector<8x128xf32>
    %c0_2 = arith.constant 0 : index
    %c0_3 = arith.constant 0 : index
    %4 = vector.load %arg3[%c0_2, %c0_3] : memref<8x128xf32, #tpu.memory_space<vmem>>, vector<8x128xf32>
    %c0_4 = arith.constant 0 : index
    %c0_5 = arith.constant 0 : index
    %5 = vector.load %arg4[%c0_4, %c0_5] : memref<128x128xf32, #tpu.memory_space<vmem>>, vector<128x128xf32>
    %cst = arith.constant dense<0.000000e+00> : vector<8x128xf32>
    %6 = tpu.matmul %4, %5, %cst {dimension_numbers = #tpu.dot_dimension_numbers<[1], [0], [0], [1], [0, 0, 1, 1], [], []>} : vector<8x128xf32>, vector<128x128xf32>, vector<8x128xf32> -> vector<8x128xf32>
    %7 = arith.addf %3, %6 : vector<8x128xf32>
    %c0_6 = arith.constant 0 : index
    %c0_7 = arith.constant 0 : index
    %8 = vector.load %arg7[%c0_6, %c0_7] : memref<8x128xf32, #tpu.memory_space<vmem>>, vector<8x128xf32>
    tpu.vector_store %arg7[%c0_6, %c0_7], %7 {strides = array<i32>} : memref<8x128xf32, #tpu.memory_space<vmem>>, vector<8x128xf32>,
    %c0_i32_8 = arith.constant 0 : i32
    %9 = arith.cmpi eq, %arg2, %c0_i32_8 : i32
    %10 = arith.extui %9 : i1 to i32
    %c0_i32_9 = arith.constant 0 : i32
    %11 = arith.cmpi ne, %10, %c0_i32_9 : i32
    scf.if %11 {
      %c0_10 = arith.constant 0 : index
      %c0_11 = arith.constant 0 : index
      %12 = vector.load %arg7[%c0_10, %c0_11] : memref<8x128xf32, #tpu.memory_space<vmem>>, vector<8x128xf32>
      %c0_12 = arith.constant 0 : index
      %c0_13 = arith.constant 0 : index
      %13 = vector.load %arg5[%c0_12, %c0_13] : memref<1x128xf32, #tpu.memory_space<vmem>>, vector<1x128xf32>
      %14 = vector.broadcast %13 : vector<1x128xf32> to vector<8x128xf32>
      %15 = arith.addf %12, %14 : vector<8x128xf32>
      %c0_14 = arith.constant 0 : index
      %c0_15 = arith.constant 0 : index
      %16 = vector.load %arg6[%c0_14, %c0_15] : memref<8x128xf32, #tpu.memory_space<vmem>>, vector<8x128xf32>
      tpu.vector_store %arg6[%c0_14, %c0_15], %15 {strides = array<i32>} : memref<8x128xf32, #tpu.memory_space<vmem>>, vector<8x128xf32>,
    } else {
    }
    return
  }
  func.func @transform_0(%arg0: i32, %arg1: i32, %arg2: i32) -> (i32, i32) {
    %c0_i32 = arith.constant 0 : i32
    return %arg0, %arg2 : i32, i32
  }
  func.func @transform_1(%arg0: i32, %arg1: i32, %arg2: i32) -> (i32, i32) {
    %c0_i32 = arith.constant 0 : i32
    return %arg2, %arg1 : i32, i32
  }
  func.func @transform_2(%arg0: i32, %arg1: i32, %arg2: i32) -> (i32, i32) {
    %c0_i32 = arith.constant 0 : i32
    %c0_i32_0 = arith.constant 0 : i32
    return %c0_i32, %arg1 : i32, i32
  }
  func.func @transform_3(%arg0: i32, %arg1: i32, %arg2: i32) -> (i32, i32) {
    %c0_i32 = arith.constant 0 : i32
    return %arg0, %arg1 : i32, i32
  }
}

</mosaic_0001>

<bundles_post_ra>
// kernel: tpu_custom_call.1
= control target key start
LH: loop header
LB: loop body
LE: loop exit
PB: predicated region body
PF: predicated region fallthrough
CT: control target
= control target key end

     0   :  { %8 = vsyncpa [#allocation4], 0  ;;  %s330_s0 = inlined_call_operand.hbm [shape: f32[8,128], index: 0, kind: input, shape index: {}]   ;;  %s331_s1 = inlined_call_operand.hbm [shape: f32[128,128], index: 1, kind: input, shape index: {}]   ;;  %s332_s2 = inlined_call_operand.vmem [shape: f32[1,128], index: 2, kind: input, shape index: {}]   ;;  %s333_s3 = inlined_call_operand.hbm [shape: f32[8,128], index: 3, kind: output, shape index: {}]  }
   0x1   :  { %9 = vsyncpa [#allocation7], 0 }
   0x2   :  { %10 = vsyncpa [#allocation5], 0  ;;  %s291_s12 = smov [#allocation3]   ;;  %s292_s14 = smov [#allocation6]  }
   0x3   :  { %s17_s13 = sshll.u32 %s291_s12, 4  ;;  %s26_s15 = sshll.u32 %s292_s14, 4  ;;  %s18_s13 = int_to_ptr.vmem [resolvable:$true] %s17_s13  ;;  %s27_s15 = int_to_ptr.vmem [resolvable:$true] %s26_s15 }
   0x4   :  { %s233_s16 = scalar_lea.vmem %s18_s13, 128  ;;  %p238_p1 = scmp.lt.s32.totalorder %s18_s13, %s18_s13 }
   0x5   :  { %p234_p0 = scmp.ne.s32.totalorder %s18_s13, %s233_s16  ;;  %p239_p2 = scmp.lt.s32.totalorder %s233_s16, %s233_s16 }
   0x7   :  { %p240_p3 = por %p239_p2, %p238_p1 }
   0x9   :  { %p241_p4 = pnand %p240_p3, %p234_p0 }
   0xb   :  { %244 = shalt.err (!%p241_p4)
}
   0xc   :  { %20 = dma.hbm_to_vmem [thread:$0]  %s330_s0, 128, %s18_s13, [#allocation4]  }
   0xd   :  { %s253_s19 = scalar_lea.vmem %s27_s15, 2048  ;;  %p258_p6 = scmp.lt.s32.totalorder %s27_s15, %s27_s15 }
   0xe   :  { %p254_p5 = scmp.ne.s32.totalorder %s27_s15, %s253_s19  ;;  %p259_p7 = scmp.lt.s32.totalorder %s253_s19, %s253_s19 }
  0x10   :  { %p260_p8 = por %p259_p7, %p258_p6 }
  0x12   :  { %p261_p9 = pnand %p260_p8, %p254_p5 }
  0x14   :  { %264 = shalt.err (!%p261_p9)
}
  0x15   :  { %s293_s20 = smov 128   ;;  %s294_s21 = smov 8  }
  0x16   :  { %32 = dma.hbm_to_vmem [thread:$0]  %s331_s1, 2048, %s27_s15, [#allocation7], %s293_s20, %s293_s20, %s294_s21  }
  0x17   :  { %285 = dma.done.wait [#allocation4], 128  }
  0x18   :  { %286 = vsyncadd [#allocation4], 4294967168 }
  0x19   :  { %287 = dma.done.wait [#allocation7], 2048  }
  0x1a   :  { %288 = vsyncadd [#allocation7], 4294965248  ;;  %v295_v0 = vmov 0.0   ;;  %vm296_vm0 = vmmov 0   ;;  %v63_v1 = vld [vmem:[#allocation6 + $0x78] sm:$0xff]  ;;  %v62_v2 = vld [vmem:[#allocation6 + $0x70] sm:$0xff] }
  0x1b   :  { %183 = vmatprep.subr.mxu0 %v295_v0  ;;  %215 = vmatprep.mubr.msk.f32.mxu0 %vm296_vm0, %v295_v0  ;;  %v61_v3 = vld [vmem:[#allocation6 + $0x68] sm:$0xff]  ;;  %v60_v4 = vld [vmem:[#allocation6 + $0x60] sm:$0xff]  ;;  %v59_v5 = vld [vmem:[#allocation6 + $0x58] sm:$0xff]  ;;  %s297_s24 = smov [#allocation8]  }
  0x1c   :  { %184 = vmatpush3.msra.mxu0 %v63_v1  ;;  %v58_v6 = vld [vmem:[#allocation6 + $0x50] sm:$0xff]  ;;  %v57_v7 = vld [vmem:[#allocation6 + $0x48] sm:$0xff]  ;;  %v56_v8 = vld [vmem:[#allocation6 + $0x40] sm:$0xff]  ;;  %s155_s25 = sshll.u32 %s297_s24, 4  ;;  %s156_s25 = int_to_ptr.vmem [resolvable:$true] %s155_s25 }
  0x1d   :  { %185 = vmatprep.subr.mxu0 %v295_v0  ;;  %v55_v9 = vld [vmem:[#allocation6 + $0x38] sm:$0xff]  ;;  %v54_v10 = vld [vmem:[#allocation6 + $0x30] sm:$0xff]  ;;  %v53_v11 = vld [vmem:[#allocation6 + $0x28] sm:$0xff]  ;;  %s265_s26 = scalar_lea.vmem %s156_s25, 128  ;;  %p270_p11 = scmp.lt.s32.totalorder %s156_s25, %s156_s25 }
  0x1e   :  { %186 = vmatpush3.msra.mxu0 %v62_v2  ;;  %v52_v12 = vld [vmem:[#allocation6 + $0x20] sm:$0xff]  ;;  %v51_v13 = vld [vmem:[#allocation6 + $0x18] sm:$0xff]  ;;  %v50_v14 = vld [vmem:[#allocation6 + $0x10] sm:$0xff]  ;;  %p266_p10 = scmp.ne.s32.totalorder %s156_s25, %s265_s26  ;;  %p271_p12 = scmp.lt.s32.totalorder %s265_s26, %s265_s26 }
  0x1f   :  { %187 = vmatprep.subr.mxu0 %v295_v0  ;;  %v49_v15 = vld [vmem:[#allocation6 + $0x8] sm:$0xff]  ;;  %v48_v16 = vld [vmem:[#allocation6] sm:$0xff]  ;;  %v47_v17 = vld [vmem:[#allocation3] sm:$0xff] }
  0x20   :  { %188 = vmatpush3.msra.mxu0 %v61_v3  ;;  %v165_v18 = vld [vmem:[%s332_s2] ss:$0 sm:$0xff]  ;;  %p272_p13 = por %p271_p12, %p270_p11 }
  0x21   :  { %189 = vmatprep.subr.mxu0 %v295_v0 }
  0x22   :  { %190 = vmatpush3.msra.mxu0 %v60_v4  ;;  %p273_p0 = pnand %p272_p13, %p266_p10 }
  0x23   :  { %191 = vmatprep.subr.mxu0 %v295_v0 }
  0x24   :  { %192 = vmatpush3.msra.mxu0 %v59_v5 }
  0x25   :  { %193 = vmatprep.subr.mxu0 %v295_v0 }
  0x26   :  { %194 = vmatpush3.msra.mxu0 %v58_v6 }
  0x27   :  { %195 = vmatprep.subr.mxu0 %v295_v0 }
  0x28   :  { %196 = vmatpush3.msra.mxu0 %v57_v7 }
  0x29   :  { %197 = vmatprep.subr.mxu0 %v295_v0 }
  0x2a   :  { %198 = vmatpush3.msra.mxu0 %v56_v8 }
  0x2b   :  { %199 = vmatprep.subr.mxu0 %v295_v0 }
  0x2c   :  { %200 = vmatpush3.msra.mxu0 %v55_v9 }
  0x2d   :  { %201 = vmatprep.subr.mxu0 %v295_v0 }
  0x2e   :  { %202 = vmatpush3.msra.mxu0 %v54_v10 }
  0x2f   :  { %203 = vmatprep.subr.mxu0 %v295_v0 }
  0x30   :  { %204 = vmatpush3.msra.mxu0 %v53_v11 }
  0x31   :  { %205 = vmatprep.subr.mxu0 %v295_v0 }
  0x32   :  { %206 = vmatpush3.msra.mxu0 %v52_v12 }
  0x33   :  { %207 = vmatprep.subr.mxu0 %v295_v0 }
  0x34   :  { %208 = vmatpush3.msra.mxu0 %v51_v13 }
  0x35   :  { %209 = vmatprep.subr.mxu0 %v295_v0 }
  0x36   :  { %210 = vmatpush3.msra.mxu0 %v50_v14 }
  0x37   :  { %211 = vmatprep.subr.mxu0 %v295_v0 }
  0x38   :  { %212 = vmatpush3.msra.mxu0 %v49_v15 }
  0x39   :  { %213 = vmatprep.subr.mxu0 %v295_v0 }
  0x3a   :  { %214 = vmatpush3.msra.mxu0 %v48_v16 }
  0x3b   :  { %216 = vmatmul.mubr.f32.vlgmr.msra.gmra.mxu0 %v47_v17 }
  0xfb   :  { %v130_v19 = vpop.f32.mrf.mxu0 }
  0xfc   :  { %v147_v20 = vadd.f32 %v165_v18, %v130_v19 }
  0xfd   :  { %v217_v21 = vpop.f32.mrf.mxu0 }
  0xfe   :  { %148 = vst [vmem:[#allocation8] sm:$0xff] %v147_v20 }
  0xff   :  { %276 = shalt.err (!%p273_p0)
}
 0x100   :  { %158 = dma.vmem_to_hbm [thread:$0]  %s156_s25, 128, %s333_s3, [#allocation5]  }
 0x101   :  { %289 = dma.done.wait [#allocation5], 128  }
 0x102   :  { %290 = vsyncadd [#allocation5], 4294967168 }
 0x103   :  { %162 = vsyncpa [#allocation4], 1 }
 0x104   :  { %163 = vsyncpa [#allocation7], 1 }
 0x105   :  { %164 = vsyncpa [#allocation5], 1 }

</bundles_post_ra>
